<compile_context>
chip_gen: v6e
topology: v6e:2x2x1
jax: 0.10.0
libtpu: 0.0.40
codegen_flags: <defaults>
</compile_context>

<pallas_src>
import functools
import math

import jax
import jax.numpy as jnp
from jax import lax
from jax.experimental import pallas as pl
from jax.experimental.pallas import tpu as pltpu


_VMEM_LIMIT = 32 * 1024 * 1024  # safe on v5e/v6e/v7x for the tile sizes below


# ----------------------------------------------------------------------------
# helpers
# ----------------------------------------------------------------------------
def _pick_tile(dim, target, align):
    """Largest multiple of `align` <= target that divides `dim`; else the full
    dim (a full-extent block is always a legal BlockSpec)."""
    if dim <= target:
        return dim
    t = (target // align) * align
    while t >= align:
        if dim % t == 0:
            return t
        t -= align
    return dim


# ----------------------------------------------------------------------------
# Tiled, pipelined linear:  out = x @ w + b   (bf16 MXU operands, f32 acc)
# ----------------------------------------------------------------------------
def _linear_kernel(x_ref, w_ref, b_ref, o_ref):
    # Single K step: no accumulator revisit needed.
    acc = jnp.dot(x_ref[...].astype(jnp.bfloat16),
                  w_ref[...].astype(jnp.bfloat16),
                  preferred_element_type=jnp.float32)
    o_ref[...] = (acc + b_ref[...].astype(jnp.float32)).astype(o_ref.dtype)


def _linear_kernel_acc(x_ref, w_ref, b_ref, o_ref, acc_ref):
    @pl.when(pl.program_id(2) == 0)
    def _init():
        acc_ref[...] = jnp.zeros_like(acc_ref)

    acc_ref[...] += jnp.dot(x_ref[...].astype(jnp.bfloat16),
                            w_ref[...].astype(jnp.bfloat16),
                            preferred_element_type=jnp.float32)

    @pl.when(pl.program_id(2) == pl.num_programs(2) - 1)
    def _finalize():
        o_ref[...] = (acc_ref[...] + b_ref[...].astype(jnp.float32)
                      ).astype(o_ref.dtype)


def linear(x, w, b, *, tm=256, tn=512, tk=None, out_dtype=None, split3=False):
    """x: (N, d_in), w: (d_in, d_out), b: (1, d_out).

    split3=True routes the three D-wide column chunks of the output to the
    leading axis, i.e. returns (3, N, d_out // 3): a fused QKV projection then
    lands directly in a layout whose Q/K/V tiles are contiguous for the flash
    kernel.  Requires (d_out // 3) % 128 == 0.
    """
    N, d_in = x.shape
    d_out = w.shape[1]
    out_dtype = out_dtype if out_dtype is not None else x.dtype

    tm = _pick_tile(N, tm, 8)
    if tk is None:
        tk = d_in if d_in <= 1024 else _pick_tile(d_in, 512, 128)
    else:
        tk = _pick_tile(d_in, tk, 128)

    if split3:
        assert d_out % 3 == 0
        d_chunk = d_out // 3
        assert d_chunk % 128 == 0, "split3 requires lane-aligned chunk width"
        tn = _pick_tile(d_chunk, tn, 128)
        nb = d_chunk // tn
        out_shape = jax.ShapeDtypeStruct((3, N, d_chunk), out_dtype)
        out_spec = pl.BlockSpec((None, tm, tn),
                                lambda i, j, k: (j // nb, i, j % nb))
    else:
        tn = _pick_tile(d_out, tn, 128)
        out_shape = jax.ShapeDtypeStruct((N, d_out), out_dtype)
        out_spec = pl.BlockSpec((tm, tn), lambda i, j, k: (i, j))

    grid = (N // tm, d_out // tn, d_in // tk)
    single_k = grid[2] == 1

    cost = pl.CostEstimate(
        flops=int(2 * N * d_in * d_out),
        transcendentals=0,
        # x re-read once per output column block, w once per output row block.
        bytes_accessed=int(N * d_in * x.dtype.itemsize * (d_out // tn)
                           + d_in * d_out * w.dtype.itemsize * (N // tm)
                           + N * d_out * jnp.dtype(out_dtype).itemsize
                           + d_out * b.dtype.itemsize),
    )
    return pl.pallas_call(
        _linear_kernel if single_k else _linear_kernel_acc,
        out_shape=out_shape,
        grid=grid,
        in_specs=[
            pl.BlockSpec((tm, tk), lambda i, j, k: (i, k)),
            pl.BlockSpec((tk, tn), lambda i, j, k: (k, j)),
            pl.BlockSpec((1, tn), lambda i, j, k: (0, j)),
        ],
        out_specs=out_spec,
        scratch_shapes=[] if single_k else [pltpu.VMEM((tm, tn), jnp.float32)],
        compiler_params=pltpu.CompilerParams(
            dimension_semantics=("parallel", "parallel", "arbitrary"),
            vmem_limit_bytes=_VMEM_LIMIT),
        cost_estimate=cost,
    )(x, w, b)


# ----------------------------------------------------------------------------
# Flash-style scaled dot-product attention (online softmax over KV tiles).
# All DMA'd blocks are lane-dense (last dim = D); heads are static lane slices.
# ----------------------------------------------------------------------------
def _flash_attn_kernel(*refs, scale, num_heads, d_k, has_mask):
    if has_mask:
        mask_ref, q_ref, k_ref, v_ref, o_ref, m_ref, l_ref, acc_ref = refs
    else:
        q_ref, k_ref, v_ref, o_ref, m_ref, l_ref, acc_ref = refs
        mask_ref = None

    ki = pl.program_id(2)

    @pl.when(ki == 0)
    def _init():
        m_ref[...] = jnp.full_like(m_ref, -1e30)
        l_ref[...] = jnp.zeros_like(l_ref)
        acc_ref[...] = jnp.zeros_like(acc_ref)

    # Lane-dense loads; the 1/sqrt(d_k) scale is folded into Q once instead of
    # scaling the (tq, tkv) score matrix per head.
    q = (q_ref[...].astype(jnp.float32) * scale).astype(jnp.bfloat16)  # (tq, D)
    k = k_ref[...].astype(jnp.bfloat16)                                # (tkv, D)
    v = v_ref[...].astype(jnp.bfloat16)                                # (tkv, D)
    masked = (mask_ref[...] == 0) if has_mask else None                # (tq, tkv)

    # Static Python loop over heads: lane-slice offsets must be static, H is
    # small and the (tq, tkv) temporaries are consumed within each iteration.
    # TODO(synk): switch to lax.fori_loop + dynamic lane slices if H gets large.
    for h in range(num_heads):
        lo = h * d_k
        # QK^T without materializing k.T: contract both operands on d_k.
        s = lax.dot_general(q[:, lo:lo + d_k], k[:, lo:lo + d_k],
                            (((1,), (1,)), ((), ())),
                            preferred_element_type=jnp.float32)        # (tq, tkv)
        if has_mask:
            s = jnp.where(masked, -1e10, s)   # torch masked_fill(mask==0, -1e10)

        m_prev = m_ref[:, h:h + 1]                                     # (tq, 1)
        m_new = jnp.maximum(m_prev, jnp.max(s, axis=-1, keepdims=True))
        alpha = jnp.exp(m_prev - m_new)
        p = jnp.exp(s - m_new)                                         # f32
        l_ref[:, h:h + 1] = alpha * l_ref[:, h:h + 1] + jnp.sum(
            p, axis=-1, keepdims=True)
        pv = lax.dot_general(p.astype(jnp.bfloat16), v[:, lo:lo + d_k],
                             (((1,), (0,)), ((), ())),
                             preferred_element_type=jnp.float32)       # (tq, d_k)
        acc_ref[:, lo:lo + d_k] = alpha * acc_ref[:, lo:lo + d_k] + pv
        m_ref[:, h:h + 1] = m_new

    @pl.when(ki == pl.num_programs(2) - 1)
    def _finalize():
        inv = pl.reciprocal(l_ref[...], approx=True)                   # EUP vrcp
        pieces = [acc_ref[:, h * d_k:(h + 1) * d_k] * inv[:, h:h + 1]
                  for h in range(num_heads)]
        # Single full-width (tq, D) store -> unmasked vst.
        o_ref[...] = jnp.concatenate(pieces, axis=-1).astype(o_ref.dtype)


def _normalize_mask(mask, batch, seq):
    """torch-style mask (0 = masked).  Accepts (S,S), (1,S,S), (B,S,S) or
    (B,1,S,S)/(1,1,S,S).  TODO(synk): per-head masks are not supported."""
    m = jnp.asarray(mask)
    if m.ndim == 4:
        assert m.shape[1] == 1, "per-head masks are not supported"
        m = m[:, 0]
    if m.ndim == 2:
        m = m[None]
    assert m.ndim == 3 and m.shape[-2:] == (seq, seq)
    assert m.shape[0] in (1, batch)
    return m.astype(jnp.int32)


def _flash_call(args, in_specs, *, B, S, D, num_heads, out_dtype, mask, tq, tkv):
    d_k = D // num_heads
    grid = (B, S // tq, S // tkv)
    has_mask = mask is not None
    kernel = functools.partial(_flash_attn_kernel,
                               scale=1.0 / math.sqrt(d_k),
                               num_heads=num_heads, d_k=d_k, has_mask=has_mask)
    args = list(args)
    in_specs = list(in_specs)
    if has_mask:
        if mask.shape[0] == 1:
            m_spec = pl.BlockSpec((None, tq, tkv), lambda b, qi, ki: (0, qi, ki))
        else:
            m_spec = pl.BlockSpec((None, tq, tkv), lambda b, qi, ki: (b, qi, ki))
        args = [mask] + args
        in_specs = [m_spec] + in_specs

    in_bytes = jnp.dtype(args[-1].dtype).itemsize
    cost = pl.CostEstimate(
        flops=int(4 * B * num_heads * S * S * d_k),
        transcendentals=int(B * num_heads * S * S),
        # Q read once, K/V re-read once per Q tile, O written once.
        bytes_accessed=int(B * S * D * in_bytes * (1 + 2 * (S // tq))
                           + B * S * D * jnp.dtype(out_dtype).itemsize),
    )
    return pl.pallas_call(
        kernel,
        out_shape=jax.ShapeDtypeStruct((B, S, D), out_dtype),
        grid=grid,
        in_specs=in_specs,
        out_specs=pl.BlockSpec((None, tq, D), lambda b, qi, ki: (b, qi, 0)),
        scratch_shapes=[
            pltpu.VMEM((tq, num_heads), jnp.float32),   # running max  m
            pltpu.VMEM((tq, num_heads), jnp.float32),   # running sum  l
            pltpu.VMEM((tq, D), jnp.float32),           # unnormalized PV acc
        ],
        compiler_params=pltpu.CompilerParams(
            dimension_semantics=("parallel", "parallel", "arbitrary"),
            vmem_limit_bytes=_VMEM_LIMIT),
        cost_estimate=cost,
    )(*args)


def flash_attention(q, k, v, num_heads, mask=None, *, tq=256, tkv=512):
    """q, k, v: (B, S, D).  Returns (B, S, D) with heads already concatenated."""
    B, S, D = q.shape
    assert D % num_heads == 0
    tq = _pick_tile(S, tq, 8)
    tkv = _pick_tile(S, tkv, 128)
    specs = [pl.BlockSpec((None, tq, D), lambda b, qi, ki: (b, qi, 0)),
             pl.BlockSpec((None, tkv, D), lambda b, qi, ki: (b, ki, 0)),
             pl.BlockSpec((None, tkv, D), lambda b, qi, ki: (b, ki, 0))]
    m = _normalize_mask(mask, B, S) if mask is not None else None
    return _flash_call([q, k, v], specs, B=B, S=S, D=D, num_heads=num_heads,
                       out_dtype=q.dtype, mask=m, tq=tq, tkv=tkv)


def flash_attention_packed(qkv3, num_heads, mask=None, *, tq=256, tkv=512):
    """qkv3: (3, B, S, D) packed projections; Q/K/V selection happens in the
    BlockSpec index_maps, so no HBM slices/copies are materialized."""
    three, B, S, D = qkv3.shape
    assert three == 3 and D % num_heads == 0
    tq = _pick_tile(S, tq, 8)
    tkv = _pick_tile(S, tkv, 128)
    specs = [pl.BlockSpec((None, None, tq, D), lambda b, qi, ki: (0, b, qi, 0)),
             pl.BlockSpec((None, None, tkv, D), lambda b, qi, ki: (1, b, ki, 0)),
             pl.BlockSpec((None, None, tkv, D), lambda b, qi, ki: (2, b, ki, 0))]
    m = _normalize_mask(mask, B, S) if mask is not None else None
    return _flash_call([qkv3, qkv3, qkv3], specs, B=B, S=S, D=D,
                       num_heads=num_heads, out_dtype=qkv3.dtype, mask=m,
                       tq=tq, tkv=tkv)


# ----------------------------------------------------------------------------
# Full MultiHeadAttention forward
# ----------------------------------------------------------------------------
def multi_head_attention(query, key, value, params, num_heads, mask=None, *,
                         compute_dtype=jnp.bfloat16, attn_tq=256, attn_tkv=512):
    B, S, D = query.shape
    assert D % num_heads == 0
    N = B * S
    w_qkv, b_qkv = params["w_qkv"], params["b_qkv"]

    # Self-attention fast path (GPT-2 usage): one fused GEMM produces Q/K/V
    # packed as (3, N, D).  Note: the identity check can silently miss under
    # jit/vmap (distinct tracers); the fallback path below is equally correct.
    fused = (query is key) and (key is value) and (D % 128 == 0)
    if fused:
        qkv3 = linear(query.reshape(N, D), w_qkv, b_qkv,
                      out_dtype=compute_dtype, split3=True)        # (3, N, D)
        attn = flash_attention_packed(qkv3.reshape(3, B, S, D), num_heads,
                                      mask=mask, tq=attn_tq, tkv=attn_tkv)
    else:
        wq, wk, wv = w_qkv[:, :D], w_qkv[:, D:2 * D], w_qkv[:, 2 * D:]
        bq, bk, bv = b_qkv[:, :D], b_qkv[:, D:2 * D], b_qkv[:, 2 * D:]
        q = linear(query.reshape(N, D), wq, bq,
                   out_dtype=compute_dtype).reshape(B, S, D)
        k = linear(key.reshape(N, D), wk, bk,
                   out_dtype=compute_dtype).reshape(B, S, D)
        v = linear(value.reshape(N, D), wv, bv,
                   out_dtype=compute_dtype).reshape(B, S, D)
        attn = flash_attention(q, k, v, num_heads, mask=mask,
                               tq=attn_tq, tkv=attn_tkv)
    out = linear(attn.reshape(N, D), params["wo"], params["bo"],
                 out_dtype=query.dtype)
    return out.reshape(B, S, D)


def make_params(key, d_model):
    """y = x @ w + b with w stored (d_in, d_out); matches nn.Linear init
    U(-1/sqrt(fan_in), 1/sqrt(fan_in)).  Q/K/V packed column-wise as (D, 3D)."""
    ks = jax.random.split(key, 4)
    lim = 1.0 / math.sqrt(d_model)

    def u(k, shape):
        return jax.random.uniform(k, shape, jnp.float32, -lim, lim)

    return {
        "w_qkv": u(ks[0], (d_model, 3 * d_model)),
        "b_qkv": u(ks[1], (1, 3 * d_model)),
        "wo":    u(ks[2], (d_model, d_model)),
        "bo":    u(ks[3], (1, d_model)),
    }


# Pure-JAX (f32) reference for the correctness checks.
def reference_mha(query, key, value, params, num_heads, mask=None):
    B, S, D = query.shape
    d_k = D // num_heads
    w_qkv, b_qkv = params["w_qkv"], params["b_qkv"]
    wq, wk, wv = w_qkv[:, :D], w_qkv[:, D:2 * D], w_qkv[:, 2 * D:]
    bq, bk, bv = b_qkv[:, :D], b_qkv[:, D:2 * D], b_qkv[:, 2 * D:]

    def proj(x, w, b):
        y = x.reshape(B * S, D) @ w + b
        return y.reshape(B, S, num_heads, d_k).transpose(0, 2, 1, 3)

    q, k, v = proj(query, wq, bq), proj(key, wk, bk), proj(value, wv, bv)
    s = jnp.einsum("bhqd,bhkd->bhqk", q, k) / math.sqrt(d_k)
    if mask is not None:
        m = jnp.asarray(mask)
        if m.ndim == 2:
            m = m[None, None]
        elif m.ndim == 3:
            m = m[:, None]
        s = jnp.where(m == 0, -1e10, s)
    w_ = jax.nn.softmax(s.astype(jnp.float32), axis=-1)
    attn = jnp.einsum("bhqk,bhkd->bhqd", w_, v)
    concat = attn.transpose(0, 2, 1, 3).reshape(B * S, D)
    return (concat @ params["wo"] + params["bo"]).reshape(B, S, D)


if __name__ == "__main__":
    # Small but lane-aligned shapes (D % 128 == 0 exercises the fused/packed
    # path); attn tiles of 128 give a 2x2 inner grid -> multi-step online softmax.
    B, S, D, H = 2, 256, 128, 4

    root = jax.random.PRNGKey(0)
    kp, kx, k1, k2, k3 = jax.random.split(root, 5)
    params = make_params(kp, D)

    # Tolerances reflect bf16 MXU operands (f32 accumulation) vs. an f32 reference.
    tol = dict(atol=2e-2, rtol=2e-2)

    # --- standalone check of the multi-K-step (accumulating) GEMM kernel ----
    xk = jax.random.normal(k1, (256, 256), jnp.float32)
    wk = jax.random.normal(k2, (256, 128), jnp.float32) * 0.05
    bk = jax.random.normal(k3, (1, 128), jnp.float32) * 0.05
    y = jax.block_until_ready(linear(xk, wk, bk, tk=128))   # 2 K steps
    assert jnp.allclose(y, xk @ wk + bk, **tol), "linear (accumulating) mismatch"

    # --- self-attention (fused QKV GEMM -> packed flash), no mask -----------
    x = jax.random.normal(kx, (B, S, D), jnp.float32)
    out_self = jax.block_until_ready(
        multi_head_attention(x, x, x, params, H, attn_tq=128, attn_tkv=128))
    ref_self = reference_mha(x, x, x, params, H)
    assert out_self.shape == (B, S, D)
    assert jnp.allclose(out_self, ref_self, **tol), "self-attention mismatch"

    # --- self-attention with a causal mask (torch masked_fill semantics) ----
    causal = jnp.tril(jnp.ones((S, S), jnp.int32))
    out_c = jax.block_until_ready(
        multi_head_attention(x, x, x, params, H, mask=causal,
                             attn_tq=128, attn_tkv=128))
    ref_c = reference_mha(x, x, x, params, H, mask=causal)
    assert jnp.allclose(out_c, ref_c, **tol), "masked self-attention mismatch"

    # --- cross-attention (distinct q/k/v, separate-array flash path) --------
    kq2, kk2, kv2 = jax.random.split(jax.random.fold_in(root, 1), 3)
    q_in = jax.random.normal(kq2, (B, S, D), jnp.float32)
    k_in = jax.random.normal(kk2, (B, S, D), jnp.float32)
    v_in = jax.random.normal(kv2, (B, S, D), jnp.float32)
    out_x = jax.block_until_ready(
        multi_head_attention(q_in, k_in, v_in, params, H,
                             attn_tq=128, attn_tkv=128))
    ref_x = reference_mha(q_in, k_in, v_in, params, H)
    assert jnp.allclose(out_x, ref_x, **tol), "cross-attention mismatch"

    print("KERNEL_OK")
</pallas_src>

<mosaic_0001>
module attributes {stable_mosaic.version = 11 : i64} {
  func.func @_linear_kernel_acc(%arg0: i32, %arg1: i32, %arg2: i32, %arg3: memref<256x128xf32, #tpu.memory_space<vmem>>, %arg4: memref<128x128xf32, #tpu.memory_space<vmem>>, %arg5: memref<1x128xf32, #tpu.memory_space<vmem>>, %arg6: memref<256x128xf32, #tpu.memory_space<vmem>>, %arg7: memref<256x128xf32, #tpu.memory_space<vmem>>) attributes {dimension_semantics = [#tpu.dimension_semantics<parallel>, #tpu.dimension_semantics<parallel>, #tpu.dimension_semantics<arbitrary>], iteration_bounds = array<i64: 1, 1, 2>, scalar_prefetch = 0 : i64, scratch_operands = 1 : i64, tpu.core_type = #tpu.core_type<tc>, window_params = [{transform_indices = @transform_0, window_bounds = array<i64: 256, 128>}, {transform_indices = @transform_1, window_bounds = array<i64: 128, 128>}, {transform_indices = @transform_2, window_bounds = array<i64: 1, 128>}, {transform_indices = @transform_3, window_bounds = array<i64: 256, 128>}]} {
    %c0_i32 = arith.constant 0 : i32
    %0 = arith.cmpi eq, %arg2, %c0_i32 : i32
    %1 = arith.extui %0 : i1 to i32
    %c0_i32_0 = arith.constant 0 : i32
    %2 = arith.cmpi ne, %1, %c0_i32_0 : i32
    scf.if %2 {
      %cst_9 = arith.constant 0.000000e+00 : f32
      %14 = vector.broadcast %cst_9 : f32 to vector<256x128xf32>
      %c0_10 = arith.constant 0 : index
      %c0_11 = arith.constant 0 : index
      %15 = vector.load %arg7[%c0_10, %c0_11] : memref<256x128xf32, #tpu.memory_space<vmem>>, vector<256x128xf32>
      tpu.vector_store %arg7[%c0_10, %c0_11], %14 {strides = array<i32>} : memref<256x128xf32, #tpu.memory_space<vmem>>, vector<256x128xf32>,
    } else {
    }
    %c0 = arith.constant 0 : index
    %c0_1 = arith.constant 0 : index
    %3 = vector.load %arg7[%c0, %c0_1] : memref<256x128xf32, #tpu.memory_space<vmem>>, vector<256x128xf32>
    %c0_2 = arith.constant 0 : index
    %c0_3 = arith.constant 0 : index
    %4 = vector.load %arg3[%c0_2, %c0_3] : memref<256x128xf32, #tpu.memory_space<vmem>>, vector<256x128xf32>
    %5 = arith.truncf %4 : vector<256x128xf32> to vector<256x128xbf16>
    %c0_4 = arith.constant 0 : index
    %c0_5 = arith.constant 0 : index
    %6 = vector.load %arg4[%c0_4, %c0_5] : memref<128x128xf32, #tpu.memory_space<vmem>>, vector<128x128xf32>
    %7 = arith.truncf %6 : vector<128x128xf32> to vector<128x128xbf16>
    %cst = arith.constant dense<0.000000e+00> : vector<256x128xf32>
    %8 = tpu.matmul %5, %7, %cst {dimension_numbers = #tpu.dot_dimension_numbers<[1], [0], [0], [1], [0, 0, 1, 1], [], []>} : vector<256x128xbf16>, vector<128x128xbf16>, vector<256x128xf32> -> vector<256x128xf32>
    %9 = arith.addf %3, %8 : vector<256x128xf32>
    %c0_6 = arith.constant 0 : index
    %c0_7 = arith.constant 0 : index
    %10 = vector.load %arg7[%c0_6, %c0_7] : memref<256x128xf32, #tpu.memory_space<vmem>>, vector<256x128xf32>
    tpu.vector_store %arg7[%c0_6, %c0_7], %9 {strides = array<i32>} : memref<256x128xf32, #tpu.memory_space<vmem>>, vector<256x128xf32>,
    %c1_i32 = arith.constant 1 : i32
    %11 = arith.cmpi eq, %arg2, %c1_i32 : i32
    %12 = arith.extui %11 : i1 to i32
    %c0_i32_8 = arith.constant 0 : i32
    %13 = arith.cmpi ne, %12, %c0_i32_8 : i32
    scf.if %13 {
      %c0_9 = arith.constant 0 : index
      %c0_10 = arith.constant 0 : index
      %14 = vector.load %arg7[%c0_9, %c0_10] : memref<256x128xf32, #tpu.memory_space<vmem>>, vector<256x128xf32>
      %c0_11 = arith.constant 0 : index
      %c0_12 = arith.constant 0 : index
      %15 = vector.load %arg5[%c0_11, %c0_12] : memref<1x128xf32, #tpu.memory_space<vmem>>, vector<1x128xf32>
      %16 = vector.broadcast %15 : vector<1x128xf32> to vector<256x128xf32>
      %17 = arith.addf %14, %16 : vector<256x128xf32>
      %c0_13 = arith.constant 0 : index
      %c0_14 = arith.constant 0 : index
      %18 = vector.load %arg6[%c0_13, %c0_14] : memref<256x128xf32, #tpu.memory_space<vmem>>, vector<256x128xf32>
      tpu.vector_store %arg6[%c0_13, %c0_14], %17 {strides = array<i32>} : memref<256x128xf32, #tpu.memory_space<vmem>>, vector<256x128xf32>,
    } else {
    }
    return
  }
  func.func @transform_0(%arg0: i32, %arg1: i32, %arg2: i32) -> (i32, i32) {
    %c0_i32 = arith.constant 0 : i32
    return %arg0, %arg2 : i32, i32
  }
  func.func @transform_1(%arg0: i32, %arg1: i32, %arg2: i32) -> (i32, i32) {
    %c0_i32 = arith.constant 0 : i32
    return %arg2, %arg1 : i32, i32
  }
  func.func @transform_2(%arg0: i32, %arg1: i32, %arg2: i32) -> (i32, i32) {
    %c0_i32 = arith.constant 0 : i32
    %c0_i32_0 = arith.constant 0 : i32
    return %c0_i32, %arg1 : i32, i32
  }
  func.func @transform_3(%arg0: i32, %arg1: i32, %arg2: i32) -> (i32, i32) {
    %c0_i32 = arith.constant 0 : i32
    return %arg0, %arg1 : i32, i32
  }
}

</mosaic_0001>

<bundles_post_ra>
// kernel: tpu_custom_call.1
= control target key start
LH: loop header
LB: loop body
LE: loop exit
PB: predicated region body
PF: predicated region fallthrough
CT: control target
= control target key end

     0   :  { %8 = vsyncpa [#allocation4], 0  ;;  %s1439_s0 = inlined_call_operand.hbm [shape: f32[256,256], index: 0, kind: input, shape index: {}]   ;;  %s1440_s1 = inlined_call_operand.hbm [shape: f32[256,128], index: 1, kind: input, shape index: {}]   ;;  %s1441_s2 = inlined_call_operand.vmem [shape: f32[1,128], index: 2, kind: input, shape index: {}]   ;;  %s1442_s3 = inlined_call_operand.hbm [shape: f32[256,128], index: 3, kind: output, shape index: {}]  }
   0x1   :  { %10 = vsyncpa [#allocation4 + $0x1], 0 }
   0x2   :  { %11 = vsyncpa [#allocation7], 0 }
   0x3   :  { %13 = vsyncpa [#allocation7 + $0x1], 0 }
   0x4   :  { %14 = vsyncpa [#allocation5], 0  ;;  %s1208_s12 = smov 0   ;;  %s1210_s13 = smov 0  }
   0x5   :  { %s1212_s14 = smov 0   ;;  %s1214_s15 = smov 0  }
   0x6   :  { %s1216_s16 = smov 0   ;;  %s1218_s17 = smov 0  }
   0x7 LB: > { %s858_s18 = sadd.s32 4294967295, %s1177_s17   ;;  %s32_s19 = sadd.s32 1, %s1173_s16  ;;  %s1177_s17 = sphi %s1218_s17, %s20_s17   ;;  %s1173_s16 = sphi %s1216_s16, %s1452_s16   ;;  %s1169_s15 = sphi %s1214_s15, %s1451_s15   ;;  %s1165_s14 = sphi %s1212_s14, %s1450_s14   ;;  %s1161_s13 = sphi %s1210_s13, %s1449_s13   ;;  %s1157_s12 = sphi %s1208_s12, %s1448_s12  }
   0x8   : > { %p33_p0 = scmp.ge.s32.totalorder %s32_s19, 2  ;;  %s48_s20 = sadd.s32 1, %s1165_s14 }
   0x9   : > { %p55_p1 = scmp.ne.s32.totalorder %s1165_s14, %s1161_s13  ;;  %p56_p2 = scmp.eq.s32.totalorder %s1177_s17, 0 }
   0xa   : > { %s1454_s19 = smov (%p33_p0, %s32_s19), 0  ;;  %p61_p4 = scmp.ne.s32.totalorder %s1161_s13, %s1157_s12 }
   0xb   : > { %p1244_p3 = por %p56_p2, %p55_p1  ;;  %s44_s22 = ssub.s32 %s1173_s16, %s1454_s19 }
   0xc   : > { %p62_p5 = scmp.eq.s32.totalorder %s858_s18, 0  ;;  %p46_p6 = scmp.eq.s32.totalorder %s44_s22, 0 }
   0xd   : > { %p981_p8 = scmp.lt.s32.totalorder %s1177_s17, 2  ;;  %s1262_s25 = sand.u32 1, %s1165_s14  }
   0xe   : > { %p1253_p7 = por %p62_p5, %p61_p4  ;;  %s863_s26 = sshll.u32 %s1173_s16, 7 }
   0xf   : > { %s1259_s24 = scalar_select %p46_p6, %s1165_s14, %s48_s20  }
  0x10   : > { %s862_s27 = sshll.u32 %s1262_s25, 8  ;;  %s185_s30 = scalar_lea.hbm %s1439_s0, %s863_s26 }
  0x11   : > { %s177_s4 = scalar_lea.vmem [#allocation3], %s862_s27  ;;  %p1271_p9 = pnand %p981_p8, %p1244_p3 }
  0x12   : > { %s186_s5 = sshll.u32 %s177_s4, 4  ;;  %p867_p10 = scmp.ge.s32.totalorder %s1177_s17, 1  ;;  %s187_s5 = int_to_ptr.vmem [resolvable:$true] %s186_s5 }
  0x13   : > { %s174_s7 = scalar_lea.sflag [#allocation4], %s1262_s25  ;;  %p1041_p11 = pneg %p1271_p9 }
  0x14   : > { %s1052_s8 = scalar_lea.vmem %s187_s5, 4096  ;;  %s1179_s9 = smov [#allocation3]  }
  0x15   : > { %p1053_p12 = scmp.ne.s32.totalorder %s187_s5, %s1052_s8  ;;  %s1057_s10 = sshll.u32 %s1179_s9, 4  ;;  %s1058_s10 = int_to_ptr.vmem [resolvable:$false] %s1057_s10 }
  0x16   : > { %s1059_s11 = scalar_lea.vmem %s1058_s10, 8192  ;;  %p1060_p1 = scmp.lt.s32.totalorder %s187_s5, %s1058_s10 }
  0x17   : > { %p1055_p13 = pnand %p1053_p12, %p1041_p11  ;;  %p1061_p2 = scmp.lt.s32.totalorder %s1059_s11, %s1052_s8 }
  0x19   : > { %p1056_p0 = pneg %p1055_p13  ;;  %p1062_p3 = por %p1061_p2, %p1060_p1 }
  0x1b   : > { %p1063_p4 = pnand %p1062_p3, %p1056_p0 }
  0x1d   : > { %1066 = shalt.err (!%p1063_p4)
}
  0x1e   : > { %s1180_s12 = smov 256   ;;  %s1181_s20 = smov 128  }
  0x1f   : > { %s1182_s21 = smov 8   ;;  %p216_p5 = scmp.lt.s32.totalorder %s1177_s17, 3 }
  0x20   : > { %977 = dma.hbm_to_vmem [thread:$0]  (!%p1271_p9), %s185_s30, 4096, %s187_s5, %s174_s7, %s1180_s12, %s1181_s20, %s1182_s21  }
  0x21   : > { %s864_s22 = sshll.u32 %s1262_s25, 7  ;;  %s877_s26 = sshll.u32 %s1173_s16, 11 }
  0x22   : > { %p1289_p6 = pnand %p867_p10, %p216_p5  ;;  %s207_s4 = scalar_lea.hbm %s1440_s1, %s877_s26 }
  0x23   : > { %s200_s8 = scalar_lea.vmem [#allocation6], %s864_s22  ;;  %s197_s10 = scalar_lea.sflag [#allocation7], %s1262_s25 }
  0x24   : > { %s208_s9 = sshll.u32 %s200_s8, 4  ;;  %s1183_s30 = smov [#allocation6]   ;;  %s209_s9 = int_to_ptr.vmem [resolvable:$true] %s208_s9 }
  0x25   : > { %s1080_s11 = scalar_lea.vmem %s209_s9, 2048  ;;  %s1085_s5 = sshll.u32 %s1183_s30, 4  ;;  %s1086_s5 = int_to_ptr.vmem [resolvable:$false] %s1085_s5 }
  0x26   : > { %p1081_p8 = scmp.ne.s32.totalorder %s209_s9, %s1080_s11  ;;  %s1087_s7 = scalar_lea.vmem %s1086_s5, 4096 }
  0x27   : > { %p1088_p10 = scmp.lt.s32.totalorder %s209_s9, %s1086_s5  ;;  %p1089_p0 = scmp.lt.s32.totalorder %s1087_s7, %s1080_s11 }
  0x28   : > { %p1083_p12 = pnand %p1081_p8, %p1041_p11 }
  0x29   : > { %p1090_p1 = por %p1089_p0, %p1088_p10 }
  0x2a   : > { %p1084_p13 = pneg %p1083_p12 }
  0x2c   : > { %p1091_p2 = pnand %p1090_p1, %p1084_p13 }
  0x2e   : > { %1094 = shalt.err (!%p1091_p2)
}
  0x2f   : > { %980 = dma.hbm_to_vmem [thread:$0]  (!%p1271_p9), %s207_s4, 2048, %s209_s9, %s197_s10, %s1181_s20, %s1181_s20, %s1182_s21  }
  0x30   : > { %220 = sbr.rel (%p1289_p6) target bundleno = 377 (0x179), region = 32  ;;  %s222_s25 = sand.u32 (!%p1289_p6), 1, %s1161_s13  }
  0x31   : > { %s868_s12 = sshll.u32 (!%p1289_p6), %s222_s25, 8  ;;  %s223_s22 = scalar_lea.sflag (!%p1289_p6), [#allocation4], %s222_s25 }
  0x32   : > { %s1305_s26 = scalar_lea.vmem (!%p1289_p6), [#allocation3], %s868_s12 }
  0x35   : > { %1144 = dma.done.wait (%p1253_p7), %s223_s22, 4096  }
  0x36   : > { %1146 = vsyncadd (%p1253_p7), %s223_s22, 4294963200  ;;  %s869_s28 = sshll.u32 %s222_s25, 7  ;;  %s232_s29 = scalar_lea.sflag [#allocation7], %s222_s25 }
  0x37   : > { %s1311_s6 = scalar_lea.vmem [#allocation6], %s869_s28 }
  0x38   : > { %1148 = dma.done.wait (%p1253_p7), %s232_s29, 2048  }
  0x39   : > { %1150 = vsyncadd (%p1253_p7), %s232_s29, 4294965248  ;;  %p870_p9 = scmp.ne.s32.totalorder %s1169_s15, 0 }
  0x3b   : > { %271 = sbr.rel (%p870_p9) target bundleno = 81 (0x51), region = 44 }
  0x40   : > { %v1184_v0 = vmov 0.0  }
  0x41   : > { %272 = vst [vmem:[#allocation2 + $0xb0] sm:$0xff] %v1184_v0  ;;  %273 = vst [vmem:[#allocation2] sm:$0xff] %v1184_v0 }
  0x42   : > { %274 = vst [vmem:[#allocation2 + $0xd8] sm:$0xff] %v1184_v0  ;;  %275 = vst [vmem:[#allocation2 + $0x18] sm:$0xff] %v1184_v0 }
  0x43   : > { %276 = vst [vmem:[#allocation2 + $0x50] sm:$0xff] %v1184_v0  ;;  %277 = vst [vmem:[#allocation2 + $0x68] sm:$0xff] %v1184_v0 }
  0x44   : > { %278 = vst [vmem:[#allocation2 + $0x30] sm:$0xff] %v1184_v0  ;;  %279 = vst [vmem:[#allocation2 + $0x48] sm:$0xff] %v1184_v0 }
  0x45   : > { %280 = vst [vmem:[#allocation2 + $0x80] sm:$0xff] %v1184_v0  ;;  %281 = vst [vmem:[#allocation2 + $0x88] sm:$0xff] %v1184_v0 }
  0x46   : > { %282 = vst [vmem:[#allocation2 + $0xe8] sm:$0xff] %v1184_v0  ;;  %283 = vst [vmem:[#allocation2 + $0xb8] sm:$0xff] %v1184_v0 }
  0x47   : > { %284 = vst [vmem:[#allocation2 + $0x60] sm:$0xff] %v1184_v0  ;;  %285 = vst [vmem:[#allocation2 + $0xf0] sm:$0xff] %v1184_v0 }
  0x48   : > { %286 = vst [vmem:[#allocation2 + $0x8] sm:$0xff] %v1184_v0  ;;  %287 = vst [vmem:[#allocation2 + $0x78] sm:$0xff] %v1184_v0 }
  0x49   : > { %288 = vst [vmem:[#allocation2 + $0x38] sm:$0xff] %v1184_v0  ;;  %289 = vst [vmem:[#allocation2 + $0x58] sm:$0xff] %v1184_v0 }
  0x4a   : > { %290 = vst [vmem:[#allocation2 + $0x40] sm:$0xff] %v1184_v0  ;;  %291 = vst [vmem:[#allocation2 + $0xc8] sm:$0xff] %v1184_v0 }
  0x4b   : > { %292 = vst [vmem:[#allocation2 + $0xe0] sm:$0xff] %v1184_v0  ;;  %293 = vst [vmem:[#allocation2 + $0x90] sm:$0xff] %v1184_v0 }
  0x4c   : > { %294 = vst [vmem:[#allocation2 + $0x70] sm:$0xff] %v1184_v0  ;;  %295 = vst [vmem:[#allocation2 + $0xc0] sm:$0xff] %v1184_v0 }
  0x4d   : > { %296 = vst [vmem:[#allocation2 + $0xa8] sm:$0xff] %v1184_v0  ;;  %297 = vst [vmem:[#allocation2 + $0xd0] sm:$0xff] %v1184_v0 }
  0x4e   : > { %298 = vst [vmem:[#allocation2 + $0x10] sm:$0xff] %v1184_v0  ;;  %299 = vst [vmem:[#allocation2 + $0x28] sm:$0xff] %v1184_v0 }
  0x4f   : > { %300 = vst [vmem:[#allocation2 + $0xa0] sm:$0xff] %v1184_v0  ;;  %301 = vst [vmem:[#allocation2 + $0xf8] sm:$0xff] %v1184_v0 }
  0x50   : > { %302 = vst [vmem:[#allocation2 + $0x20] sm:$0xff] %v1184_v0  ;;  %303 = vst [vmem:[#allocation2 + $0x98] sm:$0xff] %v1184_v0 }
  0x51 PF: > { %v398_v1 = vld [vmem:[%s1311_s6 + $0x70] sm:$0xff]  ;;  %v399_v2 = vld [vmem:[%s1311_s6 + $0x78] sm:$0xff]  ;;  %v396_v3 = vld [vmem:[%s1311_s6 + $0x60] sm:$0xff]  ;;  %p871_p7 = scmp.ne.s32.totalorder %s1169_s15, 1 }
  0x52   : > { %v407_v4 = vpack.c.bf16 %v399_v2, %v398_v1  ;;  %v397_v5 = vld [vmem:[%s1311_s6 + $0x68] sm:$0xff]  ;;  %v394_v7 = vld [vmem:[%s1311_s6 + $0x50] sm:$0xff]  ;;  %v395_v8 = vld [vmem:[%s1311_s6 + $0x58] sm:$0xff] }
  0x53   : > { %v406_v6 = vpack.c.bf16 %v397_v5, %v396_v3  ;;  %v405_v9 = vpack.c.bf16 %v395_v8, %v394_v7  ;;  %v392_v10 = vld [vmem:[%s1311_s6 + $0x40] sm:$0xff]  ;;  %v337_v12 = vld [vmem:[%s1305_s26 + $0x8] sm:$0xff]  ;;  %v390_v19 = vld [vmem:[%s1311_s6 + $0x30] sm:$0xff] }
  0x54   : > { %902 = vmatprep.subr.bf16.mxu0 %v407_v4  ;;  %950 = vmatprep.subr.bf16.mxu1 %v407_v4  ;;  %v336_v11 = vld [vmem:[%s1305_s26] sm:$0xff]  ;;  %v393_v13 = vld [vmem:[%s1311_s6 + $0x48] sm:$0xff]  ;;  %v391_v20 = vld [vmem:[%s1311_s6 + $0x38] sm:$0xff] }
  0x55   : > { %903 = vmatpush3.bf16.msra.mxu0 %v407_v4  ;;  %958 = vmatpush3.bf16.msra.mxu1 %v407_v4  ;;  %v368_v14 = vpack.c.bf16 %v337_v12, %v336_v11  ;;  %v352_v15 = vld [vmem:[%s1305_s26 + $0x80] sm:$0xff]  ;;  %v353_v16 = vld [vmem:[%s1305_s26 + $0x88] sm:$0xff]  ;;  %v404_v18 = vpack.c.bf16 %v393_v13, %v392_v10  ;;  %v403_v21 = vpack.c.bf16 %v391_v20, %v390_v19  ;;  %v386_v25 = vld [vmem:[%s1311_s6 + $0x10] sm:$0xff] }
  0x56   : > { %904 = vmatprep.subr.bf16.mxu0 %v406_v6  ;;  %951 = vmatprep.subr.bf16.mxu1 %v406_v6  ;;  %v376_v17 = vpack.c.bf16 %v353_v16, %v352_v15  ;;  %v388_v22 = vld [vmem:[%s1311_s6 + $0x20] sm:$0xff]  ;;  %v389_v23 = vld [vmem:[%s1311_s6 + $0x28] sm:$0xff]  ;;  %v387_v26 = vld [vmem:[%s1311_s6 + $0x18] sm:$0xff] }
  0x57   : > { %918 = vmatprep.mubr.bf16.mxu0 %v368_v14  ;;  %v402_v24 = vpack.c.bf16 %v389_v23, %v388_v22  ;;  %v401_v27 = vpack.c.bf16 %v387_v26, %v386_v25  ;;  %v384_v28 = vld [vmem:[%s1311_s6] sm:$0xff]  ;;  %v385_v29 = vld [vmem:[%s1311_s6 + $0x8] sm:$0xff]  ;;  %v338_v31 = vld [vmem:[%s1305_s26 + $0x10] sm:$0xff] }
  0x58   : > { %934 = vmatprep.mubr.bf16.mxu1 %v376_v17  ;;  %v400_v30 = vpack.c.bf16 %v385_v29, %v384_v28  ;;  %v339_v32 = vld [vmem:[%s1305_s26 + $0x18] sm:$0xff]  ;;  %v354_v33 = vld [vmem:[%s1305_s26 + $0x90] sm:$0xff]  ;;  %v340_v35 = vld [vmem:[%s1305_s26 + $0x20] sm:$0xff] }
  0x59   : > { %905 = vmatpush3.bf16.msra.mxu0 %v406_v6  ;;  %959 = vmatpush3.bf16.msra.mxu1 %v406_v6  ;;  %v355_v34 = vld [vmem:[%s1305_s26 + $0x98] sm:$0xff]  ;;  %v341_v36 = vld [vmem:[%s1305_s26 + $0x28] sm:$0xff]  ;;  %v356_v37 = vld [vmem:[%s1305_s26 + $0xa0] sm:$0xff]  ;;  %v369_v39 = vpack.c.bf16 %v339_v32, %v338_v31 }
  0x5a   : > { %906 = vmatprep.subr.bf16.mxu0 %v405_v9  ;;  %952 = vmatprep.subr.bf16.mxu1 %v405_v9  ;;  %v357_v38 = vld [vmem:[%s1305_s26 + $0xa8] sm:$0xff]  ;;  %v377_v40 = vpack.c.bf16 %v355_v34, %v354_v33  ;;  %v370_v41 = vpack.c.bf16 %v341_v36, %v340_v35  ;;  %v342_v43 = vld [vmem:[%s1305_s26 + $0x30] sm:$0xff]  ;;  %v343_v44 = vld [vmem:[%s1305_s26 + $0x38] sm:$0xff] }
  0x5b   : > { %v378_v42 = vpack.c.bf16 %v357_v38, %v356_v37  ;;  %v358_v45 = vld [vmem:[%s1305_s26 + $0xb0] sm:$0xff]  ;;  %v359_v46 = vld [vmem:[%s1305_s26 + $0xb8] sm:$0xff]  ;;  %v344_v47 = vld [vmem:[%s1305_s26 + $0x40] sm:$0xff]  ;;  %v371_v51 = vpack.c.bf16 %v343_v44, %v342_v43 }
  0x5c   : > { %v345_v48 = vld [vmem:[%s1305_s26 + $0x48] sm:$0xff]  ;;  %v360_v49 = vld [vmem:[%s1305_s26 + $0xc0] sm:$0xff]  ;;  %v379_v52 = vpack.c.bf16 %v359_v46, %v358_v45  ;;  %v346_v55 = vld [vmem:[%s1305_s26 + $0x50] sm:$0xff] }
  0x5d   : > { %907 = vmatpush3.bf16.msra.mxu0 %v405_v9  ;;  %960 = vmatpush3.bf16.msra.mxu1 %v405_v9  ;;  %v361_v50 = vld [vmem:[%s1305_s26 + $0xc8] sm:$0xff]  ;;  %v372_v53 = vpack.c.bf16 %v345_v48, %v344_v47  ;;  %v347_v56 = vld [vmem:[%s1305_s26 + $0x58] sm:$0xff]  ;;  %v362_v57 = vld [vmem:[%s1305_s26 + $0xd0] sm:$0xff] }
  0x5e   : > { %908 = vmatprep.subr.bf16.mxu0 %v404_v18  ;;  %953 = vmatprep.subr.bf16.mxu1 %v404_v18  ;;  %v380_v54 = vpack.c.bf16 %v361_v50, %v360_v49  ;;  %v363_v58 = vld [vmem:[%s1305_s26 + $0xd8] sm:$0xff]  ;;  %v348_v59 = vld [vmem:[%s1305_s26 + $0x60] sm:$0xff]  ;;  %v349_v60 = vld [vmem:[%s1305_s26 + $0x68] sm:$0xff]  ;;  %v373_v63 = vpack.c.bf16 %v347_v56, %v346_v55 }
  0x5f   : > { %v364_v61 = vld [vmem:[%s1305_s26 + $0xe0] sm:$0xff]  ;;  %v365_v62 = vld [vmem:[%s1305_s26 + $0xe8] sm:$0xff]  ;;  %v381_v0 = vpack.c.bf16 %v363_v58, %v362_v57  ;;  %v374_v1 = vpack.c.bf16 %v349_v60, %v348_v59  ;;  %v350_v3 = vld [vmem:[%s1305_s26 + $0x70] sm:$0xff] }
  0x60   : > { %v382_v2 = vpack.c.bf16 %v365_v62, %v364_v61  ;;  %v351_v4 = vld [vmem:[%s1305_s26 + $0x78] sm:$0xff]  ;;  %v366_v5 = vld [vmem:[%s1305_s26 + $0xf0] sm:$0xff]  ;;  %v322_v10 = vld [vmem:[#allocation2 + $0x40] sm:$0xff] }
  0x61   : > { %909 = vmatpush3.bf16.msra.mxu0 %v404_v18  ;;  %961 = vmatpush3.bf16.msra.mxu1 %v404_v18  ;;  %v367_v6 = vld [vmem:[%s1305_s26 + $0xf8] sm:$0xff]  ;;  %v375_v7 = vpack.c.bf16 %v351_v4, %v350_v3  ;;  %v304_v13 = vld [vmem:[#allocation2 + $0xb0] sm:$0xff]  ;;  %v323_v20 = vld [vmem:[#allocation2 + $0xc8] sm:$0xff] }
  0x62   : > { %910 = vmatprep.subr.bf16.mxu0 %v403_v21  ;;  %954 = vmatprep.subr.bf16.mxu1 %v403_v21  ;;  %v383_v8 = vpack.c.bf16 %v367_v6, %v366_v5  ;;  %v306_v9 = vld [vmem:[#allocation2 + $0xd8] sm:$0xff]  ;;  %v305_v25 = vld [vmem:[#allocation2] sm:$0xff]  ;;  %v310_v31 = vld [vmem:[#allocation2 + $0x30] sm:$0xff] }
  0x63   : > { %v320_v14 = vld [vmem:[#allocation2 + $0x38] sm:$0xff]  ;;  %v326_v32 = vld [vmem:[#allocation2 + $0x70] sm:$0xff]  ;;  %v324_v38 = vld [vmem:[#allocation2 + $0xe0] sm:$0xff] }
  0x64   : > { %v307_v19 = vld [vmem:[#allocation2 + $0x18] sm:$0xff]  ;;  %v308_v37 = vld [vmem:[#allocation2 + $0x50] sm:$0xff]  ;;  %v311_v43 = vld [vmem:[#allocation2 + $0x48] sm:$0xff] }
  0x65   : > { %911 = vmatpush3.bf16.msra.mxu0 %v403_v21  ;;  %962 = vmatpush3.bf16.msra.mxu1 %v403_v21  ;;  %v321_v26 = vld [vmem:[#allocation2 + $0x58] sm:$0xff]  ;;  %v327_v44 = vld [vmem:[#allocation2 + $0xc0] sm:$0xff]  ;;  %v309_v49 = vld [vmem:[#allocation2 + $0x68] sm:$0xff] }
  0x66   : > { %912 = vmatprep.subr.bf16.mxu0 %v402_v24  ;;  %955 = vmatprep.subr.bf16.mxu1 %v402_v24  ;;  %v325_v50 = vld [vmem:[#allocation2 + $0x90] sm:$0xff]  ;;  %v314_v55 = vld [vmem:[#allocation2 + $0xe8] sm:$0xff]  ;;  %v312_v61 = vld [vmem:[#allocation2 + $0x80] sm:$0xff] }
  0x67   : > { %v330_v56 = vld [vmem:[#allocation2 + $0x10] sm:$0xff]  ;;  %v328_v62 = vld [vmem:[#allocation2 + $0xa8] sm:$0xff]  ;;  %v315_v3 = vld [vmem:[#allocation2 + $0xb8] sm:$0xff] }
  0x68   : > { %v331_v4 = vld [vmem:[#allocation2 + $0x28] sm:$0xff] }
  0x69   : > { %913 = vmatpush3.bf16.msra.mxu0 %v402_v24  ;;  %963 = vmatpush3.bf16.msra.mxu1 %v402_v24 }
  0x6a   : > { %914 = vmatprep.subr.bf16.mxu0 %v401_v27  ;;  %956 = vmatprep.subr.bf16.mxu1 %v401_v27 }
  0x6d   : > { %915 = vmatpush3.bf16.msra.mxu0 %v401_v27  ;;  %964 = vmatpush3.bf16.msra.mxu1 %v401_v27 }
  0x6e   : > { %916 = vmatprep.subr.bf16.mxu0 %v400_v30  ;;  %957 = vmatprep.subr.bf16.mxu1 %v400_v30 }
  0x71   : > { %917 = vmatpush3.bf16.msra.mxu0 %v400_v30  ;;  %965 = vmatpush3.bf16.msra.mxu1 %v400_v30 }
  0x74   : > { %919 = vmatmul.mubr.bf16.vlgmr.msra.gmra.mxu0 %v369_v39  ;;  %935 = vmatmul.mubr.bf16.vlgmr.msra.gmra.mxu1 %v377_v40 }
  0x75   : > { %922 = vmatprep.mubr.bf16.mxu0 %v370_v41  ;;  %938 = vmatprep.mubr.bf16.mxu1 %v378_v42 }
  0x7c   : > { %923 = vmatmul.mubr.bf16.gmra.mxu0 %v371_v51  ;;  %939 = vmatmul.mubr.bf16.gmra.mxu1 %v379_v52 }
  0x7d   : > { %926 = vmatprep.mubr.bf16.mxu0 %v372_v53  ;;  %942 = vmatprep.mubr.bf16.mxu1 %v380_v54 }
  0x84   : > { %927 = vmatmul.mubr.bf16.gmra.mxu0 %v373_v63  ;;  %943 = vmatmul.mubr.bf16.gmra.mxu1 %v381_v0 }
  0x85   : > { %930 = vmatprep.mubr.bf16.mxu0 %v374_v1  ;;  %946 = vmatprep.mubr.bf16.mxu1 %v382_v2 }
  0x8c   : > { %931 = vmatmul.mubr.bf16.gmra.mxu0 %v375_v7  ;;  %947 = vmatmul.mubr.bf16.gmra.mxu1 %v383_v8 }
 0x134   : > { %v920_v11 = vpop.f32.mrf.mxu0  ;;  %v936_v12 = vpop.f32.mrf.mxu1 }
 0x135   : > { %v571_v15 = vadd.f32 %v920_v11, %v306_v9  ;;  %v587_v16 = vadd.f32 %v936_v12, %v322_v10  ;;  %v313_v9 = vld [vmem:[#allocation2 + $0x88] sm:$0xff]  ;;  %v329_v10 = vld [vmem:[#allocation2 + $0xd0] sm:$0xff] }
 0x136   : > { %v442_v17 = vpop.f32.mrf.mxu0  ;;  %v506_v18 = vpop.f32.mrf.mxu1 }
 0x137   : > { %603 = vst [vmem:[#allocation2 + $0xd8] sm:$0xff] %v571_v15  ;;  %619 = vst [vmem:[#allocation2 + $0x40] sm:$0xff] %v587_v16  ;;  %v569_v21 = vadd.f32 %v442_v17, %v304_v13  ;;  %v585_v22 = vadd.f32 %v506_v18, %v320_v14  ;;  %v318_v15 = vld [vmem:[#allocation2 + $0x8] sm:$0xff]  ;;  %v334_v16 = vld [vmem:[#allocation2 + $0x20] sm:$0xff] }
 0x138   : > { %v921_v23 = vpop.f32.mrf.mxu0  ;;  %v937_v24 = vpop.f32.mrf.mxu1 }
 0x139   : > { %601 = vst [vmem:[#allocation2 + $0xb0] sm:$0xff] %v569_v21  ;;  %617 = vst [vmem:[#allocation2 + $0x38] sm:$0xff] %v585_v22  ;;  %v572_v27 = vadd.f32 %v921_v23, %v307_v19  ;;  %v588_v28 = vadd.f32 %v937_v24, %v323_v20  ;;  %v316_v21 = vld [vmem:[#allocation2 + $0x60] sm:$0xff] }
 0x13a   : > { %v445_v29 = vpop.f32.mrf.mxu0  ;;  %v509_v30 = vpop.f32.mrf.mxu1  ;;  %v332_v22 = vld [vmem:[#allocation2 + $0xa0] sm:$0xff] }
 0x13b   : > { %604 = vst [vmem:[#allocation2 + $0x18] sm:$0xff] %v572_v27  ;;  %620 = vst [vmem:[#allocation2 + $0xc8] sm:$0xff] %v588_v28  ;;  %v570_v33 = vadd.f32 %v445_v29, %v305_v25  ;;  %v586_v34 = vadd.f32 %v509_v30, %v321_v26  ;;  %v319_v27 = vld [vmem:[#allocation2 + $0x78] sm:$0xff] }
 0x13c   : > { %v924_v35 = vpop.f32.mrf.mxu0  ;;  %v940_v36 = vpop.f32.mrf.mxu1  ;;  %v335_v28 = vld [vmem:[#allocation2 + $0x98] sm:$0xff] }
 0x13d   : > { %602 = vst [vmem:[#allocation2] sm:$0xff] %v570_v33  ;;  %618 = vst [vmem:[#allocation2 + $0x58] sm:$0xff] %v586_v34  ;;  %v575_v39 = vadd.f32 %v924_v35, %v310_v31  ;;  %v591_v40 = vadd.f32 %v940_v36, %v326_v32  ;;  %v317_v33 = vld [vmem:[#allocation2 + $0xf0] sm:$0xff]  ;;  %v333_v34 = vld [vmem:[#allocation2 + $0xf8] sm:$0xff] }
 0x13e   : > { %v458_v41 = vpop.f32.mrf.mxu0  ;;  %v522_v42 = vpop.f32.mrf.mxu1 }
 0x13f   : > { %607 = vst [vmem:[#allocation2 + $0x30] sm:$0xff] %v575_v39  ;;  %623 = vst [vmem:[#allocation2 + $0x70] sm:$0xff] %v591_v40  ;;  %v573_v45 = vadd.f32 %v458_v41, %v308_v37  ;;  %v589_v46 = vadd.f32 %v522_v42, %v324_v38 }
 0x140   : > { %v925_v47 = vpop.f32.mrf.mxu0  ;;  %v941_v48 = vpop.f32.mrf.mxu1 }
 0x141   : > { %605 = vst [vmem:[#allocation2 + $0x50] sm:$0xff] %v573_v45  ;;  %621 = vst [vmem:[#allocation2 + $0xe0] sm:$0xff] %v589_v46  ;;  %v576_v51 = vadd.f32 %v925_v47, %v311_v43  ;;  %v592_v52 = vadd.f32 %v941_v48, %v327_v44 }
 0x142   : > { %v461_v53 = vpop.f32.mrf.mxu0  ;;  %v525_v54 = vpop.f32.mrf.mxu1 }
 0x143   : > { %608 = vst [vmem:[#allocation2 + $0x48] sm:$0xff] %v576_v51  ;;  %624 = vst [vmem:[#allocation2 + $0xc0] sm:$0xff] %v592_v52  ;;  %v574_v57 = vadd.f32 %v461_v53, %v309_v49  ;;  %v590_v58 = vadd.f32 %v525_v54, %v325_v50 }
 0x144   : > { %v928_v59 = vpop.f32.mrf.mxu0  ;;  %v944_v60 = vpop.f32.mrf.mxu1 }
 0x145   : > { %606 = vst [vmem:[#allocation2 + $0x68] sm:$0xff] %v574_v57  ;;  %622 = vst [vmem:[#allocation2 + $0x90] sm:$0xff] %v590_v58  ;;  %v579_v63 = vadd.f32 %v928_v59, %v314_v55  ;;  %v595_v0 = vadd.f32 %v944_v60, %v330_v56 }
 0x146   : > { %v474_v1 = vpop.f32.mrf.mxu0  ;;  %v538_v2 = vpop.f32.mrf.mxu1 }
 0x147   : > { %611 = vst [vmem:[#allocation2 + $0xe8] sm:$0xff] %v579_v63  ;;  %627 = vst [vmem:[#allocation2 + $0x10] sm:$0xff] %v595_v0  ;;  %v577_v5 = vadd.f32 %v474_v1, %v312_v61  ;;  %v593_v6 = vadd.f32 %v538_v2, %v328_v62 }
 0x148   : > { %v929_v7 = vpop.f32.mrf.mxu0  ;;  %v945_v8 = vpop.f32.mrf.mxu1 }
 0x149   : > { %609 = vst [vmem:[#allocation2 + $0x80] sm:$0xff] %v577_v5  ;;  %625 = vst [vmem:[#allocation2 + $0xa8] sm:$0xff] %v593_v6  ;;  %v580_v11 = vadd.f32 %v929_v7, %v315_v3  ;;  %v596_v12 = vadd.f32 %v945_v8, %v331_v4 }
 0x14a   : > { %v477_v13 = vpop.f32.mrf.mxu0  ;;  %v541_v14 = vpop.f32.mrf.mxu1 }
 0x14b   : > { %612 = vst [vmem:[#allocation2 + $0xb8] sm:$0xff] %v580_v11  ;;  %628 = vst [vmem:[#allocation2 + $0x28] sm:$0xff] %v596_v12  ;;  %v578_v17 = vadd.f32 %v477_v13, %v313_v9  ;;  %v594_v18 = vadd.f32 %v541_v14, %v329_v10 }
 0x14c   : > { %v932_v19 = vpop.f32.mrf.mxu0  ;;  %v948_v20 = vpop.f32.mrf.mxu1 }
 0x14d   : > { %610 = vst [vmem:[#allocation2 + $0x88] sm:$0xff] %v578_v17  ;;  %626 = vst [vmem:[#allocation2 + $0xd0] sm:$0xff] %v594_v18  ;;  %v583_v23 = vadd.f32 %v932_v19, %v318_v15  ;;  %v599_v24 = vadd.f32 %v948_v20, %v334_v16 }
 0x14e   : > { %v490_v25 = vpop.f32.mrf.mxu0  ;;  %v554_v26 = vpop.f32.mrf.mxu1 }
 0x14f   : > { %615 = vst [vmem:[#allocation2 + $0x8] sm:$0xff] %v583_v23  ;;  %631 = vst [vmem:[#allocation2 + $0x20] sm:$0xff] %v599_v24  ;;  %v581_v29 = vadd.f32 %v490_v25, %v316_v21  ;;  %v597_v30 = vadd.f32 %v554_v26, %v332_v22 }
 0x150   : > { %v933_v31 = vpop.f32.mrf.mxu0  ;;  %v949_v32 = vpop.f32.mrf.mxu1 }
 0x151   : > { %613 = vst [vmem:[#allocation2 + $0x60] sm:$0xff] %v581_v29  ;;  %629 = vst [vmem:[#allocation2 + $0xa0] sm:$0xff] %v597_v30  ;;  %v584_v35 = vadd.f32 %v933_v31, %v319_v27  ;;  %v600_v36 = vadd.f32 %v949_v32, %v335_v28  ;;  %636 = sbr.rel (%p871_p7) target bundleno = 361 (0x169), region = 48 }
 0x152   : > { %v493_v37 = vpop.f32.mrf.mxu0  ;;  %v557_v38 = vpop.f32.mrf.mxu1 }
 0x153   : > { %616 = vst [vmem:[#allocation2 + $0x78] sm:$0xff] %v584_v35  ;;  %632 = vst [vmem:[#allocation2 + $0x98] sm:$0xff] %v600_v36  ;;  %v582_v39 = vadd.f32 %v493_v37, %v317_v33  ;;  %v598_v40 = vadd.f32 %v557_v38, %v333_v34 }
 0x155   : > { %614 = vst [vmem:[#allocation2 + $0xf0] sm:$0xff] %v582_v39  ;;  %630 = vst [vmem:[#allocation2 + $0xf8] sm:$0xff] %v598_v40 }
 0x156   : > { %v637_v41 = vld [vmem:[#allocation2 + $0xb0] sm:$0xff]  ;;  %v1370_v42 = vld [vmem:[%s1441_s2] ss:$0 sm:$0xff]  ;;  %v639_v46 = vld [vmem:[#allocation2 + $0xd8] sm:$0xff] }
 0x157   : > { %v638_v43 = vld [vmem:[#allocation2] sm:$0xff]  ;;  %v676_v44 = vadd.f32 %v1370_v42, %v637_v41  ;;  %v640_v47 = vld [vmem:[#allocation2 + $0x18] sm:$0xff]  ;;  %v641_v48 = vld [vmem:[#allocation2 + $0x50] sm:$0xff]  ;;  %v678_v49 = vadd.f32 %v1370_v42, %v639_v46 }
 0x158   : > { %v677_v45 = vadd.f32 %v1370_v42, %v638_v43  ;;  %v679_v50 = vadd.f32 %v1370_v42, %v640_v47  ;;  %v680_v51 = vadd.f32 %v1370_v42, %v641_v48  ;;  %v642_v52 = vld [vmem:[#allocation2 + $0x68] sm:$0xff]  ;;  %v643_v53 = vld [vmem:[#allocation2 + $0x30] sm:$0xff]  ;;  %v645_v58 = vld [vmem:[#allocation2 + $0x80] sm:$0xff] }
 0x159   : > { %v644_v54 = vld [vmem:[#allocation2 + $0x48] sm:$0xff]  ;;  %708 = vst [vmem:[#allocation8] sm:$0xff] %v676_v44  ;;  %v681_v55 = vadd.f32 %v1370_v42, %v642_v52  ;;  %v682_v56 = vadd.f32 %v1370_v42, %v643_v53  ;;  %710 = vst [vmem:[#allocation8 + $0x10] sm:$0xff] %v678_v49  ;;  %v684_v61 = vadd.f32 %v1370_v42, %v645_v58  ;;  %v648_v0 = vld [vmem:[#allocation2 + $0xb8] sm:$0xff] }
 0x15a   : > { %709 = vst [vmem:[#allocation8 + $0x8] sm:$0xff] %v677_v45  ;;  %v683_v57 = vadd.f32 %v1370_v42, %v644_v54  ;;  %v646_v59 = vld [vmem:[#allocation2 + $0x88] sm:$0xff]  ;;  %711 = vst [vmem:[#allocation8 + $0x18] sm:$0xff] %v679_v50  ;;  %v649_v1 = vld [vmem:[#allocation2 + $0x60] sm:$0xff]  ;;  %v687_v3 = vadd.f32 %v1370_v42, %v648_v0 }
 0x15b   : > { %v647_v60 = vld [vmem:[#allocation2 + $0xe8] sm:$0xff]  ;;  %712 = vst [vmem:[#allocation8 + $0x20] sm:$0xff] %v680_v51  ;;  %v685_v62 = vadd.f32 %v1370_v42, %v646_v59  ;;  %713 = vst [vmem:[#allocation8 + $0x28] sm:$0xff] %v681_v55  ;;  %v688_v4 = vadd.f32 %v1370_v42, %v649_v1  ;;  %v652_v7 = vld [vmem:[#allocation2 + $0x78] sm:$0xff] }
 0x15c   : > { %v686_v63 = vadd.f32 %v1370_v42, %v647_v60  ;;  %v650_v2 = vld [vmem:[#allocation2 + $0xf0] sm:$0xff]  ;;  %714 = vst [vmem:[#allocation8 + $0x30] sm:$0xff] %v682_v56  ;;  %715 = vst [vmem:[#allocation8 + $0x38] sm:$0xff] %v683_v57  ;;  %v651_v6 = vld [vmem:[#allocation2 + $0x8] sm:$0xff]  ;;  %v691_v10 = vadd.f32 %v1370_v42, %v652_v7 }
 0x15d   : > { %v689_v5 = vadd.f32 %v1370_v42, %v650_v2  ;;  %v653_v8 = vld [vmem:[#allocation2 + $0x38] sm:$0xff]  ;;  %716 = vst [vmem:[#allocation8 + $0x40] sm:$0xff] %v684_v61  ;;  %717 = vst [vmem:[#allocation8 + $0x48] sm:$0xff] %v685_v62  ;;  %v690_v9 = vadd.f32 %v1370_v42, %v651_v6  ;;  %v655_v13 = vld [vmem:[#allocation2 + $0x40] sm:$0xff] }
 0x15e   : > { %718 = vst [vmem:[#allocation8 + $0x50] sm:$0xff] %v686_v63  ;;  %v692_v11 = vadd.f32 %v1370_v42, %v653_v8  ;;  %v654_v12 = vld [vmem:[#allocation2 + $0x58] sm:$0xff]  ;;  %v656_v14 = vld [vmem:[#allocation2 + $0xc8] sm:$0xff]  ;;  %719 = vst [vmem:[#allocation8 + $0x58] sm:$0xff] %v687_v3  ;;  %v694_v16 = vadd.f32 %v1370_v42, %v655_v13 }
 0x15f   : > { %720 = vst [vmem:[#allocation8 + $0x60] sm:$0xff] %v688_v4  ;;  %721 = vst [vmem:[#allocation8 + $0x68] sm:$0xff] %v689_v5  ;;  %v693_v15 = vadd.f32 %v1370_v42, %v654_v12  ;;  %v695_v17 = vadd.f32 %v1370_v42, %v656_v14  ;;  %v657_v18 = vld [vmem:[#allocation2 + $0xe0] sm:$0xff]  ;;  %v658_v19 = vld [vmem:[#allocation2 + $0x90] sm:$0xff] }
 0x160   : > { %v659_v20 = vld [vmem:[#allocation2 + $0x70] sm:$0xff]  ;;  %722 = vst [vmem:[#allocation8 + $0x70] sm:$0xff] %v690_v9  ;;  %723 = vst [vmem:[#allocation8 + $0x78] sm:$0xff] %v691_v10  ;;  %v696_v21 = vadd.f32 %v1370_v42, %v657_v18  ;;  %v697_v22 = vadd.f32 %v1370_v42, %v658_v19  ;;  %v660_v24 = vld [vmem:[#allocation2 + $0xc0] sm:$0xff] }
 0x161   : > { %724 = vst [vmem:[#allocation8 + $0x80] sm:$0xff] %v692_v11  ;;  %v698_v23 = vadd.f32 %v1370_v42, %v659_v20  ;;  %v661_v25 = vld [vmem:[#allocation2 + $0xa8] sm:$0xff]  ;;  %v662_v26 = vld [vmem:[#allocation2 + $0xd0] sm:$0xff]  ;;  %725 = vst [vmem:[#allocation8 + $0x88] sm:$0xff] %v693_v15  ;;  %v699_v27 = vadd.f32 %v1370_v42, %v660_v24 }
 0x162   : > { %726 = vst [vmem:[#allocation8 + $0x90] sm:$0xff] %v694_v16  ;;  %727 = vst [vmem:[#allocation8 + $0x98] sm:$0xff] %v695_v17  ;;  %v700_v28 = vadd.f32 %v1370_v42, %v661_v25  ;;  %v701_v29 = vadd.f32 %v1370_v42, %v662_v26  ;;  %v663_v30 = vld [vmem:[#allocation2 + $0x10] sm:$0xff]  ;;  %v664_v31 = vld [vmem:[#allocation2 + $0x28] sm:$0xff] }
 0x163   : > { %v665_v32 = vld [vmem:[#allocation2 + $0xa0] sm:$0xff]  ;;  %728 = vst [vmem:[#allocation8 + $0xa0] sm:$0xff] %v696_v21  ;;  %729 = vst [vmem:[#allocation8 + $0xa8] sm:$0xff] %v697_v22  ;;  %v702_v33 = vadd.f32 %v1370_v42, %v663_v30  ;;  %v703_v34 = vadd.f32 %v1370_v42, %v664_v31  ;;  %v666_v36 = vld [vmem:[#allocation2 + $0xf8] sm:$0xff] }
 0x164   : > { %730 = vst [vmem:[#allocation8 + $0xb0] sm:$0xff] %v698_v23  ;;  %v704_v35 = vadd.f32 %v1370_v42, %v665_v32  ;;  %v667_v37 = vld [vmem:[#allocation2 + $0x20] sm:$0xff]  ;;  %v668_v38 = vld [vmem:[#allocation2 + $0x98] sm:$0xff]  ;;  %731 = vst [vmem:[#allocation8 + $0xb8] sm:$0xff] %v699_v27  ;;  %v705_v39 = vadd.f32 %v1370_v42, %v666_v36 }
 0x165   : > { %732 = vst [vmem:[#allocation8 + $0xc0] sm:$0xff] %v700_v28  ;;  %733 = vst [vmem:[#allocation8 + $0xc8] sm:$0xff] %v701_v29  ;;  %v706_v40 = vadd.f32 %v1370_v42, %v667_v37  ;;  %v707_v41 = vadd.f32 %v1370_v42, %v668_v38 }
 0x166   : > { %734 = vst [vmem:[#allocation8 + $0xd0] sm:$0xff] %v702_v33  ;;  %735 = vst [vmem:[#allocation8 + $0xd8] sm:$0xff] %v703_v34 }
 0x167   : > { %736 = vst [vmem:[#allocation8 + $0xe0] sm:$0xff] %v704_v35  ;;  %737 = vst [vmem:[#allocation8 + $0xe8] sm:$0xff] %v705_v39 }
 0x168   : > { %738 = vst [vmem:[#allocation8 + $0xf0] sm:$0xff] %v706_v40  ;;  %739 = vst [vmem:[#allocation8 + $0xf8] sm:$0xff] %v707_v41 }
 0x169 PF: > { %p1406_p11 = scmp.eq.s32.totalorder %s858_s18, 1  ;;  %s1185_s21 = smov [#allocation8]  }
 0x16a   : > { %s750_s27 = sshll.u32 %s1185_s21, 4  ;;  %s751_s27 = int_to_ptr.vmem [resolvable:$true] %s750_s27 }
 0x16b   : > { %s1095_s4 = scalar_lea.vmem %s751_s27, 4096  ;;  %p1102_p6 = scmp.lt.s32.totalorder %s751_s27, %s751_s27 }
 0x16c   : > { %p1096_p3 = scmp.ne.s32.totalorder %s751_s27, %s1095_s4  ;;  %p1103_p8 = scmp.lt.s32.totalorder %s1095_s4, %s1095_s4 }
 0x16e   : > { %p1097_p4 = pnand %p1096_p3, %p1406_p11  ;;  %p1104_p12 = por %p1103_p8, %p1102_p6 }
 0x170   : > { %p1098_p5 = pneg %p1097_p4 }
 0x172   : > { %p1105_p13 = pnand %p1104_p12, %p1098_p5 }
 0x174   : > { %1108 = shalt.err (!%p1105_p13)
}
 0x175   : > { %s1186_s8 = smov 128   ;;  %s1187_s18 = smov 8  }
 0x176   : > { %971 = dma.vmem_to_hbm [thread:$0]  (%p1406_p11), %s751_s27, 4096, %s1442_s3, [#allocation5], %s1186_s8, %s1186_s8, %s1187_s18  }
 0x177   : > { %1152 = dma.done.wait (%p1406_p11), [#allocation5], 4096  }
 0x178   : > { %1154 = vsyncadd (%p1406_p11), [#allocation5], 4294963200 }
 0x179 PF: > { %s20_s17 = sadd.s32 1, %s1177_s17   ;;  %s1448_s12 = smov %s1161_s13 }
 0x17a   : > { %p17_p10 = scmp.ge.s32.totalorder %s20_s17, 4   ;;  %s1449_s13 = smov %s1165_s14 }
 0x17b   : > { %s1450_s14 = smov %s1259_s24  ;;  %s1451_s15 = smov %s1173_s16 }
 0x17c   : > { %s1452_s16 = smov %s1454_s19  ;;  %19 = sbr.rel (!%p17_p10) target bundleno = 7 (0x7), region = 94 }
 0x181   :  { %766 = vsyncpa [#allocation4], 1 }
 0x182   :  { %768 = vsyncpa [#allocation4 + $0x1], 1 }
 0x183   :  { %769 = vsyncpa [#allocation7], 1 }
 0x184   :  { %771 = vsyncpa [#allocation7 + $0x1], 1 }
 0x185   :  { %772 = vsyncpa [#allocation5], 1 }
 0x186   :  { %774 = vsyncpa [#allocation5 + $0x1], 1 }

</bundles_post_ra>
